<compile_context>
chip_gen: v7x
topology: tpu7x:2x2x1
jax: 0.10.0
libtpu: 0.0.40
codegen_flags: <defaults>
</compile_context>

<pallas_src>
import functools

import jax
import jax.numpy as jnp
from jax.experimental import pallas as pl
from jax.experimental.pallas import tpu as pltpu


def _class_embed_kernel(idx_ref, emb_hbm, out_ref, copy_sems, uc_row,
                        *, tb, n_valid, n_padded, uc_class, dedup_uc):
    """Gather up to `tb` embedding rows from HBM into the output block.

    idx_ref:   SMEM (n_padded,) int32  -- UCG-resolved class ids (scalar prefetch)
    emb_hbm:   HBM  (n_classes, Ep)    -- embedding table (32-bit rows)
    out_ref:   VMEM (tb, Ep)           -- lane-dense output block for this step
    copy_sems: DMA semaphores (tb + 1,)
    uc_row:    VMEM (1, Ep)            -- scratch for the "unconditional" row
    """
    g = pl.program_id(0)
    base = g * tb
    not_last = g < pl.num_programs(0) - 1
    has_pad = n_padded != n_valid           # static python bool
    rem = n_valid % tb                      # valid rows in last step (if padded)

    copies = []
    dma_conds = []
    fill_conds = []
    any_uc = None

    # Pass 1: issue all row DMAs back-to-back so they overlap each other.
    for i in range(tb):
        row = idx_ref[base + i]

        # Padded tail rows exist only on the last grid step (statically pruned
        # guard: no conditionals at all when the batch divides the tile).
        if has_pad and i >= rem:
            valid = not_last
        else:
            valid = None                    # statically always valid

        if dedup_uc:
            is_uc = row == uc_class
            not_uc = jnp.logical_not(is_uc)
            if valid is None:
                dma_cond = not_uc
                fill_cond = is_uc
            else:
                dma_cond = jnp.logical_and(valid, not_uc)
                fill_cond = jnp.logical_and(valid, is_uc)
            any_uc = fill_cond if any_uc is None else jnp.logical_or(any_uc, fill_cond)
        else:
            dma_cond = valid
            fill_cond = None

        cp = pltpu.make_async_copy(
            emb_hbm.at[pl.ds(row, 1), :],
            out_ref.at[pl.ds(i, 1), :],
            copy_sems.at[i],
        )
        if dma_cond is None:
            cp.start()
        else:
            @pl.when(dma_cond)
            def _(cp=cp):
                cp.start()

        copies.append(cp)
        dma_conds.append(dma_cond)
        fill_conds.append(fill_cond)

    # Dropped rows: fetch the unconditional-class row once (only if needed,
    # overlapped with the in-flight row DMAs) and VPU-broadcast it.
    if dedup_uc:
        @pl.when(any_uc)
        def _():
            uc_cp = pltpu.make_async_copy(
                emb_hbm.at[pl.ds(uc_class, 1), :], uc_row, copy_sems.at[tb])
            uc_cp.start()
            uc_cp.wait()

        for i, fill_cond in enumerate(fill_conds):
            @pl.when(fill_cond)
            def _(i=i):
                out_ref[pl.ds(i, 1), :] = uc_row[...]

    # Pass 2: wait on the SAME descriptor objects, under the same conditions.
    for cp, cond in zip(copies, dma_conds):
        if cond is None:
            cp.wait()
        else:
            @pl.when(cond)
            def _(cp=cp):
                cp.wait()


def _select_tile_b(batch, row_bytes, tile_b):
    """Compile-time row tile: multiple of 8; double-buffered output <= ~8 MiB
    (fits v5e's 16 MiB scoped VMEM, large headroom on v7x's 64 MiB); keep >= 4
    grid steps when the batch allows (v7x 2 TCs + pipeline depth)."""
    tb = max(8, (int(tile_b) // 8) * 8)
    max_rows = max(8, ((4 << 20) // max(int(row_bytes), 1)) // 8 * 8)
    tb = min(tb, max_rows)
    while tb > 8 and (batch + tb - 1) // tb < 4:
        tb = max(8, ((tb // 2) // 8) * 8)
    return tb


def class_embedder_forward(class_ids, uniforms, emb_table, *, ucg_rate,
                           disable_dropout=False, tile_b=64):
    """class_ids: (B,) int; uniforms: (B,) f32 in [0,1); emb_table: (C, E)."""
    B = class_ids.shape[0]
    n_classes, embed_dim = emb_table.shape
    orig_dtype = emb_table.dtype

    # --- Resolve UCG dropout to a single int32 index array (scalar prefetch).
    class_ids = class_ids.astype(jnp.int32)
    dropout_active = (ucg_rate > 0.0) and (not disable_dropout)
    if dropout_active:
        # Drop (-> unconditional class) iff u < ucg_rate, matching
        # torch.bernoulli(p) direction in the reference.
        idx = jnp.where(uniforms.astype(jnp.float32) < jnp.float32(ucg_rate),
                        jnp.int32(n_classes - 1), class_ids)
    else:
        idx = class_ids
    # Clamp: an out-of-range id must not become a silent OOB HBM DMA.
    idx = jnp.clip(idx, 0, n_classes - 1).astype(jnp.int32)

    # --- Sub-32-bit tables: pack rows into u32 containers so per-row DMAs and
    # the output stores stay 32-bit dense (no masked partial-word stores).
    itemsize = jnp.dtype(orig_dtype).itemsize
    packed = False
    if itemsize < 4 and embed_dim % (4 // itemsize) == 0:
        ratio = 4 // itemsize
        table = jax.lax.bitcast_convert_type(
            emb_table.reshape(n_classes, embed_dim // ratio, ratio), jnp.uint32)
        work_dtype = jnp.uint32
        e_packed = embed_dim // ratio
        packed = True
    elif itemsize < 4:
        # TODO(synk): odd embed_dim for a sub-32-bit table; widen instead of packing.
        table = emb_table.astype(jnp.float32)
        work_dtype = jnp.float32
        e_packed = embed_dim
    else:
        table = emb_table
        work_dtype = orig_dtype
        e_packed = embed_dim
    row_bytes = e_packed * jnp.dtype(work_dtype).itemsize

    # --- Coarsen the grid: amortize the ~600-cycle per-step overhead.
    tb = _select_tile_b(B, row_bytes, tile_b)
    b_padded = ((B + tb - 1) // tb) * tb
    if b_padded != B:
        idx = jnp.concatenate([idx, jnp.zeros((b_padded - B,), jnp.int32)])

    kernel = functools.partial(
        _class_embed_kernel, tb=tb, n_valid=B, n_padded=b_padded,
        uc_class=n_classes - 1, dedup_uc=dropout_active)

    grid_spec = pltpu.PrefetchScalarGridSpec(
        num_scalar_prefetch=1,                       # resolved class ids -> SMEM
        grid=(b_padded // tb,),
        in_specs=[
            # Table stays in HBM; rows are gathered by in-kernel DMA.
            pl.BlockSpec(memory_space=pl.ANY),
        ],
        out_specs=pl.BlockSpec((tb, e_packed), lambda g, idx_ref: (g, 0)),
        scratch_shapes=[
            pltpu.SemaphoreType.DMA((tb + 1,)),      # per-row sems + uc-row sem
            pltpu.VMEM((1, e_packed), work_dtype),   # cached unconditional row
        ],
    )

    out = pl.pallas_call(
        kernel,
        out_shape=jax.ShapeDtypeStruct((b_padded, e_packed), work_dtype),
        grid_spec=grid_spec,
        compiler_params=pltpu.CompilerParams(
            dimension_semantics=("parallel",)),      # rows independent -> 2 TCs on v7x
        cost_estimate=pl.CostEstimate(
            flops=0, transcendentals=0,
            bytes_accessed=2 * b_padded * int(row_bytes) + 4 * b_padded),
    )(idx, table)

    if packed:
        out = jax.lax.bitcast_convert_type(out, orig_dtype)
        out = out.reshape(b_padded, embed_dim)
    # Match PyTorch nn.Embedding(c[:, None]) output layout: (B, 1, E).
    return out[:B].astype(orig_dtype).reshape(B, 1, embed_dim)


def reference_forward(class_ids, uniforms, emb_table, *, ucg_rate,
                      disable_dropout=False):
    """Pure-JAX reference mirroring the PyTorch forward."""
    n_classes = emb_table.shape[0]
    c = class_ids[:, None].astype(jnp.float32)                      # (B, 1)
    if ucg_rate > 0.0 and not disable_dropout:
        bern = (uniforms[:, None] < ucg_rate).astype(jnp.float32)   # bernoulli(p)
        mask = 1.0 - bern
        c = mask * c + (1.0 - mask) * float(n_classes - 1)
    idx = c.astype(jnp.int32)                                       # (B, 1)
    return emb_table[idx]                                           # (B, 1, E)


if __name__ == "__main__":
    key = jax.random.PRNGKey(0)
    k_emb, k_cls, k_u, k_emb2, k_cls2, k_u2 = jax.random.split(key, 6)

    embed_dim = 128
    n_classes = 1000
    ucg_rate = 0.1
    B = 8

    emb_table = (jax.random.normal(k_emb, (n_classes, embed_dim), jnp.float32)
                 * 0.02)
    class_ids = jax.random.randint(k_cls, (B,), 0, n_classes, jnp.int32)
    uniforms = jax.random.uniform(k_u, (B,), jnp.float32)

    # Basic dropout path.
    out = jax.block_until_ready(
        class_embedder_forward(class_ids, uniforms, emb_table,
                               ucg_rate=ucg_rate, disable_dropout=False))
    ref = reference_forward(class_ids, uniforms, emb_table,
                            ucg_rate=ucg_rate, disable_dropout=False)
    assert out.shape == (B, 1, embed_dim), out.shape
    assert jnp.array_equal(out, ref), "mismatch vs. reference"

    # disable_dropout path (pure lookup, no uc caching code).
    out_nd = jax.block_until_ready(
        class_embedder_forward(class_ids, uniforms, emb_table,
                               ucg_rate=ucg_rate, disable_dropout=True))
    ref_nd = reference_forward(class_ids, uniforms, emb_table,
                               ucg_rate=ucg_rate, disable_dropout=True)
    assert jnp.array_equal(out_nd, ref_nd), "mismatch (disable_dropout)"

    # Larger, non-multiple batch: multi-step grid, padded-tail DMA skipping,
    # per-step cached unconditional row.
    B2 = 50
    cls2 = jax.random.randint(k_cls2, (B2,), 0, n_classes, jnp.int32)
    u2 = jax.random.uniform(k_u2, (B2,), jnp.float32)
    out2 = jax.block_until_ready(
        class_embedder_forward(cls2, u2, emb_table,
                               ucg_rate=ucg_rate, disable_dropout=False))
    ref2 = reference_forward(cls2, u2, emb_table,
                             ucg_rate=ucg_rate, disable_dropout=False)
    assert out2.shape == (B2, 1, embed_dim), out2.shape
    assert jnp.array_equal(out2, ref2), "mismatch (padded batch)"

    # bf16 table: exercises the u32 packing path (rows stay 32-bit dense).
    emb_bf16 = (jax.random.normal(k_emb2, (n_classes, 256), jnp.float32)
                * 0.02).astype(jnp.bfloat16)
    out_bf = jax.block_until_ready(
        class_embedder_forward(class_ids, uniforms, emb_bf16,
                               ucg_rate=ucg_rate, disable_dropout=False))
    ref_bf = reference_forward(class_ids, uniforms, emb_bf16,
                               ucg_rate=ucg_rate, disable_dropout=False)
    assert out_bf.shape == (B, 1, 256), out_bf.shape
    assert jnp.array_equal(out_bf, ref_bf), "mismatch (bf16 packed)"

    print("KERNEL_OK")
</pallas_src>

<mosaic_0001>
module attributes {stable_mosaic.version = 11 : i64} {
  func.func @_class_embed_kernel(%arg0: i32, %arg1: memref<8xi32, #tpu.memory_space<smem>>, %arg2: memref<1000x128xf32, #tpu.memory_space<any>>, %arg3: memref<8x128xf32, #tpu.memory_space<vmem>>, %arg4: memref<9x!tpu.dma_semaphore, #tpu.memory_space<semaphore_mem>>, %arg5: memref<1x128xf32, #tpu.memory_space<vmem>>) attributes {dimension_semantics = [#tpu.dimension_semantics<parallel>], iteration_bounds = array<i64: 1>, scalar_prefetch = 1 : i64, scratch_operands = 2 : i64, tpu.core_type = #tpu.core_type<tc>, window_params = [{}, {transform_indices = @transform_1, window_bounds = array<i64: 8, 128>}]} {
    %c8_i32 = arith.constant 8 : i32
    %0 = arith.muli %arg0, %c8_i32 : i32
    %c0_i32 = arith.constant 0 : i32
    %1 = arith.addi %0, %c0_i32 : i32
    %2 = arith.index_cast %1 : i32 to index
    %3 = memref.load %arg1[%2] : memref<8xi32, #tpu.memory_space<smem>>
    %c999_i32 = arith.constant 999 : i32
    %4 = arith.cmpi eq, %3, %c999_i32 : i32
    %true = arith.constant true
    %5 = arith.xori %4, %true : i1
    %6 = arith.extui %5 : i1 to i32
    %c0_i32_0 = arith.constant 0 : i32
    %c0_i32_1 = arith.constant 0 : i32
    %7 = arith.cmpi ne, %6, %c0_i32_1 : i32
    scf.if %7 {
      %c0_i32_55 = arith.constant 0 : i32
      %98 = tpu.memref_slice %arg2[%3, %c0_i32_55] : memref<1000x128xf32, #tpu.memory_space<any>> -> memref<1x128xf32, #tpu.memory_space<any>>
      %c0_i32_56 = arith.constant 0 : i32
      %c0_i32_57 = arith.constant 0 : i32
      %99 = tpu.memref_slice %arg3[%c0_i32_56, %c0_i32_57] : memref<8x128xf32, #tpu.memory_space<vmem>> -> memref<1x128xf32, #tpu.memory_space<vmem>>
      %100 = tpu.memref_slice %arg4[%c0_i32_0] : memref<9x!tpu.dma_semaphore, #tpu.memory_space<semaphore_mem>> -> memref<1x!tpu.dma_semaphore, #tpu.memory_space<semaphore_mem>>
      %101 = tpu.memref_squeeze %100 : memref<1x!tpu.dma_semaphore, #tpu.memory_space<semaphore_mem>> -> memref<!tpu.dma_semaphore, #tpu.memory_space<semaphore_mem>>
      tpu.enqueue_dma source(%98 : memref<1x128xf32, #tpu.memory_space<any>>) target(%99 : memref<1x128xf32, #tpu.memory_space<vmem>>) target_semaphore(%101 : memref<!tpu.dma_semaphore, #tpu.memory_space<semaphore_mem>>)
    } else {
    }
    %c1_i32 = arith.constant 1 : i32
    %8 = arith.addi %0, %c1_i32 : i32
    %9 = arith.index_cast %8 : i32 to index
    %10 = memref.load %arg1[%9] : memref<8xi32, #tpu.memory_space<smem>>
    %c999_i32_2 = arith.constant 999 : i32
    %11 = arith.cmpi eq, %10, %c999_i32_2 : i32
    %true_3 = arith.constant true
    %12 = arith.xori %11, %true_3 : i1
    %13 = arith.ori %4, %11 : i1
    %14 = arith.extui %12 : i1 to i32
    %c1_i32_4 = arith.constant 1 : i32
    %c0_i32_5 = arith.constant 0 : i32
    %15 = arith.cmpi ne, %14, %c0_i32_5 : i32
    scf.if %15 {
      %c0_i32_55 = arith.constant 0 : i32
      %98 = tpu.memref_slice %arg2[%10, %c0_i32_55] : memref<1000x128xf32, #tpu.memory_space<any>> -> memref<1x128xf32, #tpu.memory_space<any>>
      %c1_i32_56 = arith.constant 1 : i32
      %c0_i32_57 = arith.constant 0 : i32
      %99 = tpu.memref_slice %arg3[%c1_i32_56, %c0_i32_57] : memref<8x128xf32, #tpu.memory_space<vmem>> -> memref<1x128xf32, #tpu.memory_space<vmem>>
      %100 = tpu.memref_slice %arg4[%c1_i32_4] : memref<9x!tpu.dma_semaphore, #tpu.memory_space<semaphore_mem>> -> memref<1x!tpu.dma_semaphore, #tpu.memory_space<semaphore_mem>>
      %101 = tpu.memref_squeeze %100 : memref<1x!tpu.dma_semaphore, #tpu.memory_space<semaphore_mem>> -> memref<!tpu.dma_semaphore, #tpu.memory_space<semaphore_mem>>
      tpu.enqueue_dma source(%98 : memref<1x128xf32, #tpu.memory_space<any>>) target(%99 : memref<1x128xf32, #tpu.memory_space<vmem>>) target_semaphore(%101 : memref<!tpu.dma_semaphore, #tpu.memory_space<semaphore_mem>>)
    } else {
    }
    %c2_i32 = arith.constant 2 : i32
    %16 = arith.addi %0, %c2_i32 : i32
    %17 = arith.index_cast %16 : i32 to index
    %18 = memref.load %arg1[%17] : memref<8xi32, #tpu.memory_space<smem>>
    %c999_i32_6 = arith.constant 999 : i32
    %19 = arith.cmpi eq, %18, %c999_i32_6 : i32
    %true_7 = arith.constant true
    %20 = arith.xori %19, %true_7 : i1
    %21 = arith.ori %13, %19 : i1
    %22 = arith.extui %20 : i1 to i32
    %c2_i32_8 = arith.constant 2 : i32
    %c0_i32_9 = arith.constant 0 : i32
    %23 = arith.cmpi ne, %22, %c0_i32_9 : i32
    scf.if %23 {
      %c0_i32_55 = arith.constant 0 : i32
      %98 = tpu.memref_slice %arg2[%18, %c0_i32_55] : memref<1000x128xf32, #tpu.memory_space<any>> -> memref<1x128xf32, #tpu.memory_space<any>>
      %c2_i32_56 = arith.constant 2 : i32
      %c0_i32_57 = arith.constant 0 : i32
      %99 = tpu.memref_slice %arg3[%c2_i32_56, %c0_i32_57] : memref<8x128xf32, #tpu.memory_space<vmem>> -> memref<1x128xf32, #tpu.memory_space<vmem>>
      %100 = tpu.memref_slice %arg4[%c2_i32_8] : memref<9x!tpu.dma_semaphore, #tpu.memory_space<semaphore_mem>> -> memref<1x!tpu.dma_semaphore, #tpu.memory_space<semaphore_mem>>
      %101 = tpu.memref_squeeze %100 : memref<1x!tpu.dma_semaphore, #tpu.memory_space<semaphore_mem>> -> memref<!tpu.dma_semaphore, #tpu.memory_space<semaphore_mem>>
      tpu.enqueue_dma source(%98 : memref<1x128xf32, #tpu.memory_space<any>>) target(%99 : memref<1x128xf32, #tpu.memory_space<vmem>>) target_semaphore(%101 : memref<!tpu.dma_semaphore, #tpu.memory_space<semaphore_mem>>)
    } else {
    }
    %c3_i32 = arith.constant 3 : i32
    %24 = arith.addi %0, %c3_i32 : i32
    %25 = arith.index_cast %24 : i32 to index
    %26 = memref.load %arg1[%25] : memref<8xi32, #tpu.memory_space<smem>>
    %c999_i32_10 = arith.constant 999 : i32
    %27 = arith.cmpi eq, %26, %c999_i32_10 : i32
    %true_11 = arith.constant true
    %28 = arith.xori %27, %true_11 : i1
    %29 = arith.ori %21, %27 : i1
    %30 = arith.extui %28 : i1 to i32
    %c3_i32_12 = arith.constant 3 : i32
    %c0_i32_13 = arith.constant 0 : i32
    %31 = arith.cmpi ne, %30, %c0_i32_13 : i32
    scf.if %31 {
      %c0_i32_55 = arith.constant 0 : i32
      %98 = tpu.memref_slice %arg2[%26, %c0_i32_55] : memref<1000x128xf32, #tpu.memory_space<any>> -> memref<1x128xf32, #tpu.memory_space<any>>
      %c3_i32_56 = arith.constant 3 : i32
      %c0_i32_57 = arith.constant 0 : i32
      %99 = tpu.memref_slice %arg3[%c3_i32_56, %c0_i32_57] : memref<8x128xf32, #tpu.memory_space<vmem>> -> memref<1x128xf32, #tpu.memory_space<vmem>>
      %100 = tpu.memref_slice %arg4[%c3_i32_12] : memref<9x!tpu.dma_semaphore, #tpu.memory_space<semaphore_mem>> -> memref<1x!tpu.dma_semaphore, #tpu.memory_space<semaphore_mem>>
      %101 = tpu.memref_squeeze %100 : memref<1x!tpu.dma_semaphore, #tpu.memory_space<semaphore_mem>> -> memref<!tpu.dma_semaphore, #tpu.memory_space<semaphore_mem>>
      tpu.enqueue_dma source(%98 : memref<1x128xf32, #tpu.memory_space<any>>) target(%99 : memref<1x128xf32, #tpu.memory_space<vmem>>) target_semaphore(%101 : memref<!tpu.dma_semaphore, #tpu.memory_space<semaphore_mem>>)
    } else {
    }
    %c4_i32 = arith.constant 4 : i32
    %32 = arith.addi %0, %c4_i32 : i32
    %33 = arith.index_cast %32 : i32 to index
    %34 = memref.load %arg1[%33] : memref<8xi32, #tpu.memory_space<smem>>
    %c999_i32_14 = arith.constant 999 : i32
    %35 = arith.cmpi eq, %34, %c999_i32_14 : i32
    %true_15 = arith.constant true
    %36 = arith.xori %35, %true_15 : i1
    %37 = arith.ori %29, %35 : i1
    %38 = arith.extui %36 : i1 to i32
    %c4_i32_16 = arith.constant 4 : i32
    %c0_i32_17 = arith.constant 0 : i32
    %39 = arith.cmpi ne, %38, %c0_i32_17 : i32
    scf.if %39 {
      %c0_i32_55 = arith.constant 0 : i32
      %98 = tpu.memref_slice %arg2[%34, %c0_i32_55] : memref<1000x128xf32, #tpu.memory_space<any>> -> memref<1x128xf32, #tpu.memory_space<any>>
      %c4_i32_56 = arith.constant 4 : i32
      %c0_i32_57 = arith.constant 0 : i32
      %99 = tpu.memref_slice %arg3[%c4_i32_56, %c0_i32_57] : memref<8x128xf32, #tpu.memory_space<vmem>> -> memref<1x128xf32, #tpu.memory_space<vmem>>
      %100 = tpu.memref_slice %arg4[%c4_i32_16] : memref<9x!tpu.dma_semaphore, #tpu.memory_space<semaphore_mem>> -> memref<1x!tpu.dma_semaphore, #tpu.memory_space<semaphore_mem>>
      %101 = tpu.memref_squeeze %100 : memref<1x!tpu.dma_semaphore, #tpu.memory_space<semaphore_mem>> -> memref<!tpu.dma_semaphore, #tpu.memory_space<semaphore_mem>>
      tpu.enqueue_dma source(%98 : memref<1x128xf32, #tpu.memory_space<any>>) target(%99 : memref<1x128xf32, #tpu.memory_space<vmem>>) target_semaphore(%101 : memref<!tpu.dma_semaphore, #tpu.memory_space<semaphore_mem>>)
    } else {
    }
    %c5_i32 = arith.constant 5 : i32
    %40 = arith.addi %0, %c5_i32 : i32
    %41 = arith.index_cast %40 : i32 to index
    %42 = memref.load %arg1[%41] : memref<8xi32, #tpu.memory_space<smem>>
    %c999_i32_18 = arith.constant 999 : i32
    %43 = arith.cmpi eq, %42, %c999_i32_18 : i32
    %true_19 = arith.constant true
    %44 = arith.xori %43, %true_19 : i1
    %45 = arith.ori %37, %43 : i1
    %46 = arith.extui %44 : i1 to i32
    %c5_i32_20 = arith.constant 5 : i32
    %c0_i32_21 = arith.constant 0 : i32
    %47 = arith.cmpi ne, %46, %c0_i32_21 : i32
    scf.if %47 {
      %c0_i32_55 = arith.constant 0 : i32
      %98 = tpu.memref_slice %arg2[%42, %c0_i32_55] : memref<1000x128xf32, #tpu.memory_space<any>> -> memref<1x128xf32, #tpu.memory_space<any>>
      %c5_i32_56 = arith.constant 5 : i32
      %c0_i32_57 = arith.constant 0 : i32
      %99 = tpu.memref_slice %arg3[%c5_i32_56, %c0_i32_57] : memref<8x128xf32, #tpu.memory_space<vmem>> -> memref<1x128xf32, #tpu.memory_space<vmem>>
      %100 = tpu.memref_slice %arg4[%c5_i32_20] : memref<9x!tpu.dma_semaphore, #tpu.memory_space<semaphore_mem>> -> memref<1x!tpu.dma_semaphore, #tpu.memory_space<semaphore_mem>>
      %101 = tpu.memref_squeeze %100 : memref<1x!tpu.dma_semaphore, #tpu.memory_space<semaphore_mem>> -> memref<!tpu.dma_semaphore, #tpu.memory_space<semaphore_mem>>
      tpu.enqueue_dma source(%98 : memref<1x128xf32, #tpu.memory_space<any>>) target(%99 : memref<1x128xf32, #tpu.memory_space<vmem>>) target_semaphore(%101 : memref<!tpu.dma_semaphore, #tpu.memory_space<semaphore_mem>>)
    } else {
    }
    %c6_i32 = arith.constant 6 : i32
    %48 = arith.addi %0, %c6_i32 : i32
    %49 = arith.index_cast %48 : i32 to index
    %50 = memref.load %arg1[%49] : memref<8xi32, #tpu.memory_space<smem>>
    %c999_i32_22 = arith.constant 999 : i32
    %51 = arith.cmpi eq, %50, %c999_i32_22 : i32
    %true_23 = arith.constant true
    %52 = arith.xori %51, %true_23 : i1
    %53 = arith.ori %45, %51 : i1
    %54 = arith.extui %52 : i1 to i32
    %c6_i32_24 = arith.constant 6 : i32
    %c0_i32_25 = arith.constant 0 : i32
    %55 = arith.cmpi ne, %54, %c0_i32_25 : i32
    scf.if %55 {
      %c0_i32_55 = arith.constant 0 : i32
      %98 = tpu.memref_slice %arg2[%50, %c0_i32_55] : memref<1000x128xf32, #tpu.memory_space<any>> -> memref<1x128xf32, #tpu.memory_space<any>>
      %c6_i32_56 = arith.constant 6 : i32
      %c0_i32_57 = arith.constant 0 : i32
      %99 = tpu.memref_slice %arg3[%c6_i32_56, %c0_i32_57] : memref<8x128xf32, #tpu.memory_space<vmem>> -> memref<1x128xf32, #tpu.memory_space<vmem>>
      %100 = tpu.memref_slice %arg4[%c6_i32_24] : memref<9x!tpu.dma_semaphore, #tpu.memory_space<semaphore_mem>> -> memref<1x!tpu.dma_semaphore, #tpu.memory_space<semaphore_mem>>
      %101 = tpu.memref_squeeze %100 : memref<1x!tpu.dma_semaphore, #tpu.memory_space<semaphore_mem>> -> memref<!tpu.dma_semaphore, #tpu.memory_space<semaphore_mem>>
      tpu.enqueue_dma source(%98 : memref<1x128xf32, #tpu.memory_space<any>>) target(%99 : memref<1x128xf32, #tpu.memory_space<vmem>>) target_semaphore(%101 : memref<!tpu.dma_semaphore, #tpu.memory_space<semaphore_mem>>)
    } else {
    }
    %c7_i32 = arith.constant 7 : i32
    %56 = arith.addi %0, %c7_i32 : i32
    %57 = arith.index_cast %56 : i32 to index
    %58 = memref.load %arg1[%57] : memref<8xi32, #tpu.memory_space<smem>>
    %c999_i32_26 = arith.constant 999 : i32
    %59 = arith.cmpi eq, %58, %c999_i32_26 : i32
    %true_27 = arith.constant true
    %60 = arith.xori %59, %true_27 : i1
    %61 = arith.ori %53, %59 : i1
    %62 = arith.extui %60 : i1 to i32
    %c7_i32_28 = arith.constant 7 : i32
    %c0_i32_29 = arith.constant 0 : i32
    %63 = arith.cmpi ne, %62, %c0_i32_29 : i32
    scf.if %63 {
      %c0_i32_55 = arith.constant 0 : i32
      %98 = tpu.memref_slice %arg2[%58, %c0_i32_55] : memref<1000x128xf32, #tpu.memory_space<any>> -> memref<1x128xf32, #tpu.memory_space<any>>
      %c7_i32_56 = arith.constant 7 : i32
      %c0_i32_57 = arith.constant 0 : i32
      %99 = tpu.memref_slice %arg3[%c7_i32_56, %c0_i32_57] : memref<8x128xf32, #tpu.memory_space<vmem>> -> memref<1x128xf32, #tpu.memory_space<vmem>>
      %100 = tpu.memref_slice %arg4[%c7_i32_28] : memref<9x!tpu.dma_semaphore, #tpu.memory_space<semaphore_mem>> -> memref<1x!tpu.dma_semaphore, #tpu.memory_space<semaphore_mem>>
      %101 = tpu.memref_squeeze %100 : memref<1x!tpu.dma_semaphore, #tpu.memory_space<semaphore_mem>> -> memref<!tpu.dma_semaphore, #tpu.memory_space<semaphore_mem>>
      tpu.enqueue_dma source(%98 : memref<1x128xf32, #tpu.memory_space<any>>) target(%99 : memref<1x128xf32, #tpu.memory_space<vmem>>) target_semaphore(%101 : memref<!tpu.dma_semaphore, #tpu.memory_space<semaphore_mem>>)
    } else {
    }
    %64 = arith.extui %61 : i1 to i32
    %c0_i32_30 = arith.constant 0 : i32
    %65 = arith.cmpi ne, %64, %c0_i32_30 : i32
    scf.if %65 {
      %c8_i32_55 = arith.constant 8 : i32
      %c999_i32_56 = arith.constant 999 : i32
      %c0_i32_57 = arith.constant 0 : i32
      %98 = tpu.memref_slice %arg2[%c999_i32_56, %c0_i32_57] : memref<1000x128xf32, #tpu.memory_space<any>> -> memref<1x128xf32, #tpu.memory_space<any>>
      %99 = tpu.memref_slice %arg4[%c8_i32_55] : memref<9x!tpu.dma_semaphore, #tpu.memory_space<semaphore_mem>> -> memref<1x!tpu.dma_semaphore, #tpu.memory_space<semaphore_mem>>
      %100 = tpu.memref_squeeze %99 : memref<1x!tpu.dma_semaphore, #tpu.memory_space<semaphore_mem>> -> memref<!tpu.dma_semaphore, #tpu.memory_space<semaphore_mem>>
      tpu.enqueue_dma source(%98 : memref<1x128xf32, #tpu.memory_space<any>>) target(%arg5 : memref<1x128xf32, #tpu.memory_space<vmem>>) target_semaphore(%100 : memref<!tpu.dma_semaphore, #tpu.memory_space<semaphore_mem>>)
      %c8_i32_58 = arith.constant 8 : i32
      %c999_i32_59 = arith.constant 999 : i32
      %c0_i32_60 = arith.constant 0 : i32
      %101 = tpu.memref_slice %arg2[%c999_i32_59, %c0_i32_60] : memref<1000x128xf32, #tpu.memory_space<any>> -> memref<1x128xf32, #tpu.memory_space<any>>
      %102 = tpu.memref_slice %arg4[%c8_i32_58] : memref<9x!tpu.dma_semaphore, #tpu.memory_space<semaphore_mem>> -> memref<1x!tpu.dma_semaphore, #tpu.memory_space<semaphore_mem>>
      %103 = tpu.memref_squeeze %102 : memref<1x!tpu.dma_semaphore, #tpu.memory_space<semaphore_mem>> -> memref<!tpu.dma_semaphore, #tpu.memory_space<semaphore_mem>>
      tpu.wait_dma2 semaphore(%103 : memref<!tpu.dma_semaphore, #tpu.memory_space<semaphore_mem>>) src(%101 : memref<1x128xf32, #tpu.memory_space<any>>) dst(%arg5 : memref<1x128xf32, #tpu.memory_space<vmem>>)
    } else {
    }
    %66 = arith.extui %4 : i1 to i32
    %c0_i32_31 = arith.constant 0 : i32
    %67 = arith.cmpi ne, %66, %c0_i32_31 : i32
    scf.if %67 {
      %c0 = arith.constant 0 : index
      %c0_55 = arith.constant 0 : index
      %98 = vector.load %arg5[%c0, %c0_55] : memref<1x128xf32, #tpu.memory_space<vmem>>, vector<1x128xf32>
      %c0_56 = arith.constant 0 : index
      %c0_57 = arith.constant 0 : index
      %99 = vector.load %arg3[%c0_56, %c0_57] : memref<8x128xf32, #tpu.memory_space<vmem>>, vector<1x128xf32>
      tpu.vector_store %arg3[%c0_56, %c0_57], %98 {strides = array<i32>} : memref<8x128xf32, #tpu.memory_space<vmem>>, vector<1x128xf32>,
    } else {
    }
    %68 = arith.extui %11 : i1 to i32
    %c0_i32_32 = arith.constant 0 : i32
    %69 = arith.cmpi ne, %68, %c0_i32_32 : i32
    scf.if %69 {
      %c0 = arith.constant 0 : index
      %c0_55 = arith.constant 0 : index
      %98 = vector.load %arg5[%c0, %c0_55] : memref<1x128xf32, #tpu.memory_space<vmem>>, vector<1x128xf32>
      %c1 = arith.constant 1 : index
      %c0_56 = arith.constant 0 : index
      %99 = vector.load %arg3[%c1, %c0_56] : memref<8x128xf32, #tpu.memory_space<vmem>>, vector<1x128xf32>
      tpu.vector_store %arg3[%c1, %c0_56], %98 {strides = array<i32>} : memref<8x128xf32, #tpu.memory_space<vmem>>, vector<1x128xf32>,
    } else {
    }
    %70 = arith.extui %19 : i1 to i32
    %c0_i32_33 = arith.constant 0 : i32
    %71 = arith.cmpi ne, %70, %c0_i32_33 : i32
    scf.if %71 {
      %c0 = arith.constant 0 : index
      %c0_55 = arith.constant 0 : index
      %98 = vector.load %arg5[%c0, %c0_55] : memref<1x128xf32, #tpu.memory_space<vmem>>, vector<1x128xf32>
      %c2 = arith.constant 2 : index
      %c0_56 = arith.constant 0 : index
      %99 = vector.load %arg3[%c2, %c0_56] : memref<8x128xf32, #tpu.memory_space<vmem>>, vector<1x128xf32>
      tpu.vector_store %arg3[%c2, %c0_56], %98 {strides = array<i32>} : memref<8x128xf32, #tpu.memory_space<vmem>>, vector<1x128xf32>,
    } else {
    }
    %72 = arith.extui %27 : i1 to i32
    %c0_i32_34 = arith.constant 0 : i32
    %73 = arith.cmpi ne, %72, %c0_i32_34 : i32
    scf.if %73 {
      %c0 = arith.constant 0 : index
      %c0_55 = arith.constant 0 : index
      %98 = vector.load %arg5[%c0, %c0_55] : memref<1x128xf32, #tpu.memory_space<vmem>>, vector<1x128xf32>
      %c3 = arith.constant 3 : index
      %c0_56 = arith.constant 0 : index
      %99 = vector.load %arg3[%c3, %c0_56] : memref<8x128xf32, #tpu.memory_space<vmem>>, vector<1x128xf32>
      tpu.vector_store %arg3[%c3, %c0_56], %98 {strides = array<i32>} : memref<8x128xf32, #tpu.memory_space<vmem>>, vector<1x128xf32>,
    } else {
    }
    %74 = arith.extui %35 : i1 to i32
    %c0_i32_35 = arith.constant 0 : i32
    %75 = arith.cmpi ne, %74, %c0_i32_35 : i32
    scf.if %75 {
      %c0 = arith.constant 0 : index
      %c0_55 = arith.constant 0 : index
      %98 = vector.load %arg5[%c0, %c0_55] : memref<1x128xf32, #tpu.memory_space<vmem>>, vector<1x128xf32>
      %c4 = arith.constant 4 : index
      %c0_56 = arith.constant 0 : index
      %99 = vector.load %arg3[%c4, %c0_56] : memref<8x128xf32, #tpu.memory_space<vmem>>, vector<1x128xf32>
      tpu.vector_store %arg3[%c4, %c0_56], %98 {strides = array<i32>} : memref<8x128xf32, #tpu.memory_space<vmem>>, vector<1x128xf32>,
    } else {
    }
    %76 = arith.extui %43 : i1 to i32
    %c0_i32_36 = arith.constant 0 : i32
    %77 = arith.cmpi ne, %76, %c0_i32_36 : i32
    scf.if %77 {
      %c0 = arith.constant 0 : index
      %c0_55 = arith.constant 0 : index
      %98 = vector.load %arg5[%c0, %c0_55] : memref<1x128xf32, #tpu.memory_space<vmem>>, vector<1x128xf32>
      %c5 = arith.constant 5 : index
      %c0_56 = arith.constant 0 : index
      %99 = vector.load %arg3[%c5, %c0_56] : memref<8x128xf32, #tpu.memory_space<vmem>>, vector<1x128xf32>
      tpu.vector_store %arg3[%c5, %c0_56], %98 {strides = array<i32>} : memref<8x128xf32, #tpu.memory_space<vmem>>, vector<1x128xf32>,
    } else {
    }
    %78 = arith.extui %51 : i1 to i32
    %c0_i32_37 = arith.constant 0 : i32
    %79 = arith.cmpi ne, %78, %c0_i32_37 : i32
    scf.if %79 {
      %c0 = arith.constant 0 : index
      %c0_55 = arith.constant 0 : index
      %98 = vector.load %arg5[%c0, %c0_55] : memref<1x128xf32, #tpu.memory_space<vmem>>, vector<1x128xf32>
      %c6 = arith.constant 6 : index
      %c0_56 = arith.constant 0 : index
      %99 = vector.load %arg3[%c6, %c0_56] : memref<8x128xf32, #tpu.memory_space<vmem>>, vector<1x128xf32>
      tpu.vector_store %arg3[%c6, %c0_56], %98 {strides = array<i32>} : memref<8x128xf32, #tpu.memory_space<vmem>>, vector<1x128xf32>,
    } else {
    }
    %80 = arith.extui %59 : i1 to i32
    %c0_i32_38 = arith.constant 0 : i32
    %81 = arith.cmpi ne, %80, %c0_i32_38 : i32
    scf.if %81 {
      %c0 = arith.constant 0 : index
      %c0_55 = arith.constant 0 : index
      %98 = vector.load %arg5[%c0, %c0_55] : memref<1x128xf32, #tpu.memory_space<vmem>>, vector<1x128xf32>
      %c7 = arith.constant 7 : index
      %c0_56 = arith.constant 0 : index
      %99 = vector.load %arg3[%c7, %c0_56] : memref<8x128xf32, #tpu.memory_space<vmem>>, vector<1x128xf32>
      tpu.vector_store %arg3[%c7, %c0_56], %98 {strides = array<i32>} : memref<8x128xf32, #tpu.memory_space<vmem>>, vector<1x128xf32>,
    } else {
    }
    %82 = arith.extui %5 : i1 to i32
    %c0_i32_39 = arith.constant 0 : i32
    %c0_i32_40 = arith.constant 0 : i32
    %83 = arith.cmpi ne, %82, %c0_i32_40 : i32
    scf.if %83 {
      %c0_i32_55 = arith.constant 0 : i32
      %98 = tpu.memref_slice %arg2[%3, %c0_i32_55] : memref<1000x128xf32, #tpu.memory_space<any>> -> memref<1x128xf32, #tpu.memory_space<any>>
      %c0_i32_56 = arith.constant 0 : i32
      %c0_i32_57 = arith.constant 0 : i32
      %99 = tpu.memref_slice %arg3[%c0_i32_56, %c0_i32_57] : memref<8x128xf32, #tpu.memory_space<vmem>> -> memref<1x128xf32, #tpu.memory_space<vmem>>
      %100 = tpu.memref_slice %arg4[%c0_i32_39] : memref<9x!tpu.dma_semaphore, #tpu.memory_space<semaphore_mem>> -> memref<1x!tpu.dma_semaphore, #tpu.memory_space<semaphore_mem>>
      %101 = tpu.memref_squeeze %100 : memref<1x!tpu.dma_semaphore, #tpu.memory_space<semaphore_mem>> -> memref<!tpu.dma_semaphore, #tpu.memory_space<semaphore_mem>>
      tpu.wait_dma2 semaphore(%101 : memref<!tpu.dma_semaphore, #tpu.memory_space<semaphore_mem>>) src(%98 : memref<1x128xf32, #tpu.memory_space<any>>) dst(%99 : memref<1x128xf32, #tpu.memory_space<vmem>>)
    } else {
    }
    %84 = arith.extui %12 : i1 to i32
    %c1_i32_41 = arith.constant 1 : i32
    %c0_i32_42 = arith.constant 0 : i32
    %85 = arith.cmpi ne, %84, %c0_i32_42 : i32
    scf.if %85 {
      %c0_i32_55 = arith.constant 0 : i32
      %98 = tpu.memref_slice %arg2[%10, %c0_i32_55] : memref<1000x128xf32, #tpu.memory_space<any>> -> memref<1x128xf32, #tpu.memory_space<any>>
      %c1_i32_56 = arith.constant 1 : i32
      %c0_i32_57 = arith.constant 0 : i32
      %99 = tpu.memref_slice %arg3[%c1_i32_56, %c0_i32_57] : memref<8x128xf32, #tpu.memory_space<vmem>> -> memref<1x128xf32, #tpu.memory_space<vmem>>
      %100 = tpu.memref_slice %arg4[%c1_i32_41] : memref<9x!tpu.dma_semaphore, #tpu.memory_space<semaphore_mem>> -> memref<1x!tpu.dma_semaphore, #tpu.memory_space<semaphore_mem>>
      %101 = tpu.memref_squeeze %100 : memref<1x!tpu.dma_semaphore, #tpu.memory_space<semaphore_mem>> -> memref<!tpu.dma_semaphore, #tpu.memory_space<semaphore_mem>>
      tpu.wait_dma2 semaphore(%101 : memref<!tpu.dma_semaphore, #tpu.memory_space<semaphore_mem>>) src(%98 : memref<1x128xf32, #tpu.memory_space<any>>) dst(%99 : memref<1x128xf32, #tpu.memory_space<vmem>>)
    } else {
    }
    %86 = arith.extui %20 : i1 to i32
    %c2_i32_43 = arith.constant 2 : i32
    %c0_i32_44 = arith.constant 0 : i32
    %87 = arith.cmpi ne, %86, %c0_i32_44 : i32
    scf.if %87 {
      %c0_i32_55 = arith.constant 0 : i32
      %98 = tpu.memref_slice %arg2[%18, %c0_i32_55] : memref<1000x128xf32, #tpu.memory_space<any>> -> memref<1x128xf32, #tpu.memory_space<any>>
      %c2_i32_56 = arith.constant 2 : i32
      %c0_i32_57 = arith.constant 0 : i32
      %99 = tpu.memref_slice %arg3[%c2_i32_56, %c0_i32_57] : memref<8x128xf32, #tpu.memory_space<vmem>> -> memref<1x128xf32, #tpu.memory_space<vmem>>
      %100 = tpu.memref_slice %arg4[%c2_i32_43] : memref<9x!tpu.dma_semaphore, #tpu.memory_space<semaphore_mem>> -> memref<1x!tpu.dma_semaphore, #tpu.memory_space<semaphore_mem>>
      %101 = tpu.memref_squeeze %100 : memref<1x!tpu.dma_semaphore, #tpu.memory_space<semaphore_mem>> -> memref<!tpu.dma_semaphore, #tpu.memory_space<semaphore_mem>>
      tpu.wait_dma2 semaphore(%101 : memref<!tpu.dma_semaphore, #tpu.memory_space<semaphore_mem>>) src(%98 : memref<1x128xf32, #tpu.memory_space<any>>) dst(%99 : memref<1x128xf32, #tpu.memory_space<vmem>>)
    } else {
    }
    %88 = arith.extui %28 : i1 to i32
    %c3_i32_45 = arith.constant 3 : i32
    %c0_i32_46 = arith.constant 0 : i32
    %89 = arith.cmpi ne, %88, %c0_i32_46 : i32
    scf.if %89 {
      %c0_i32_55 = arith.constant 0 : i32
      %98 = tpu.memref_slice %arg2[%26, %c0_i32_55] : memref<1000x128xf32, #tpu.memory_space<any>> -> memref<1x128xf32, #tpu.memory_space<any>>
      %c3_i32_56 = arith.constant 3 : i32
      %c0_i32_57 = arith.constant 0 : i32
      %99 = tpu.memref_slice %arg3[%c3_i32_56, %c0_i32_57] : memref<8x128xf32, #tpu.memory_space<vmem>> -> memref<1x128xf32, #tpu.memory_space<vmem>>
      %100 = tpu.memref_slice %arg4[%c3_i32_45] : memref<9x!tpu.dma_semaphore, #tpu.memory_space<semaphore_mem>> -> memref<1x!tpu.dma_semaphore, #tpu.memory_space<semaphore_mem>>
      %101 = tpu.memref_squeeze %100 : memref<1x!tpu.dma_semaphore, #tpu.memory_space<semaphore_mem>> -> memref<!tpu.dma_semaphore, #tpu.memory_space<semaphore_mem>>
      tpu.wait_dma2 semaphore(%101 : memref<!tpu.dma_semaphore, #tpu.memory_space<semaphore_mem>>) src(%98 : memref<1x128xf32, #tpu.memory_space<any>>) dst(%99 : memref<1x128xf32, #tpu.memory_space<vmem>>)
    } else {
    }
    %90 = arith.extui %36 : i1 to i32
    %c4_i32_47 = arith.constant 4 : i32
    %c0_i32_48 = arith.constant 0 : i32
    %91 = arith.cmpi ne, %90, %c0_i32_48 : i32
    scf.if %91 {
      %c0_i32_55 = arith.constant 0 : i32
      %98 = tpu.memref_slice %arg2[%34, %c0_i32_55] : memref<1000x128xf32, #tpu.memory_space<any>> -> memref<1x128xf32, #tpu.memory_space<any>>
      %c4_i32_56 = arith.constant 4 : i32
      %c0_i32_57 = arith.constant 0 : i32
      %99 = tpu.memref_slice %arg3[%c4_i32_56, %c0_i32_57] : memref<8x128xf32, #tpu.memory_space<vmem>> -> memref<1x128xf32, #tpu.memory_space<vmem>>
      %100 = tpu.memref_slice %arg4[%c4_i32_47] : memref<9x!tpu.dma_semaphore, #tpu.memory_space<semaphore_mem>> -> memref<1x!tpu.dma_semaphore, #tpu.memory_space<semaphore_mem>>
      %101 = tpu.memref_squeeze %100 : memref<1x!tpu.dma_semaphore, #tpu.memory_space<semaphore_mem>> -> memref<!tpu.dma_semaphore, #tpu.memory_space<semaphore_mem>>
      tpu.wait_dma2 semaphore(%101 : memref<!tpu.dma_semaphore, #tpu.memory_space<semaphore_mem>>) src(%98 : memref<1x128xf32, #tpu.memory_space<any>>) dst(%99 : memref<1x128xf32, #tpu.memory_space<vmem>>)
    } else {
    }
    %92 = arith.extui %44 : i1 to i32
    %c5_i32_49 = arith.constant 5 : i32
    %c0_i32_50 = arith.constant 0 : i32
    %93 = arith.cmpi ne, %92, %c0_i32_50 : i32
    scf.if %93 {
      %c0_i32_55 = arith.constant 0 : i32
      %98 = tpu.memref_slice %arg2[%42, %c0_i32_55] : memref<1000x128xf32, #tpu.memory_space<any>> -> memref<1x128xf32, #tpu.memory_space<any>>
      %c5_i32_56 = arith.constant 5 : i32
      %c0_i32_57 = arith.constant 0 : i32
      %99 = tpu.memref_slice %arg3[%c5_i32_56, %c0_i32_57] : memref<8x128xf32, #tpu.memory_space<vmem>> -> memref<1x128xf32, #tpu.memory_space<vmem>>
      %100 = tpu.memref_slice %arg4[%c5_i32_49] : memref<9x!tpu.dma_semaphore, #tpu.memory_space<semaphore_mem>> -> memref<1x!tpu.dma_semaphore, #tpu.memory_space<semaphore_mem>>
      %101 = tpu.memref_squeeze %100 : memref<1x!tpu.dma_semaphore, #tpu.memory_space<semaphore_mem>> -> memref<!tpu.dma_semaphore, #tpu.memory_space<semaphore_mem>>
      tpu.wait_dma2 semaphore(%101 : memref<!tpu.dma_semaphore, #tpu.memory_space<semaphore_mem>>) src(%98 : memref<1x128xf32, #tpu.memory_space<any>>) dst(%99 : memref<1x128xf32, #tpu.memory_space<vmem>>)
    } else {
    }
    %94 = arith.extui %52 : i1 to i32
    %c6_i32_51 = arith.constant 6 : i32
    %c0_i32_52 = arith.constant 0 : i32
    %95 = arith.cmpi ne, %94, %c0_i32_52 : i32
    scf.if %95 {
      %c0_i32_55 = arith.constant 0 : i32
      %98 = tpu.memref_slice %arg2[%50, %c0_i32_55] : memref<1000x128xf32, #tpu.memory_space<any>> -> memref<1x128xf32, #tpu.memory_space<any>>
      %c6_i32_56 = arith.constant 6 : i32
      %c0_i32_57 = arith.constant 0 : i32
      %99 = tpu.memref_slice %arg3[%c6_i32_56, %c0_i32_57] : memref<8x128xf32, #tpu.memory_space<vmem>> -> memref<1x128xf32, #tpu.memory_space<vmem>>
      %100 = tpu.memref_slice %arg4[%c6_i32_51] : memref<9x!tpu.dma_semaphore, #tpu.memory_space<semaphore_mem>> -> memref<1x!tpu.dma_semaphore, #tpu.memory_space<semaphore_mem>>
      %101 = tpu.memref_squeeze %100 : memref<1x!tpu.dma_semaphore, #tpu.memory_space<semaphore_mem>> -> memref<!tpu.dma_semaphore, #tpu.memory_space<semaphore_mem>>
      tpu.wait_dma2 semaphore(%101 : memref<!tpu.dma_semaphore, #tpu.memory_space<semaphore_mem>>) src(%98 : memref<1x128xf32, #tpu.memory_space<any>>) dst(%99 : memref<1x128xf32, #tpu.memory_space<vmem>>)
    } else {
    }
    %96 = arith.extui %60 : i1 to i32
    %c7_i32_53 = arith.constant 7 : i32
    %c0_i32_54 = arith.constant 0 : i32
    %97 = arith.cmpi ne, %96, %c0_i32_54 : i32
    scf.if %97 {
      %c0_i32_55 = arith.constant 0 : i32
      %98 = tpu.memref_slice %arg2[%58, %c0_i32_55] : memref<1000x128xf32, #tpu.memory_space<any>> -> memref<1x128xf32, #tpu.memory_space<any>>
      %c7_i32_56 = arith.constant 7 : i32
      %c0_i32_57 = arith.constant 0 : i32
      %99 = tpu.memref_slice %arg3[%c7_i32_56, %c0_i32_57] : memref<8x128xf32, #tpu.memory_space<vmem>> -> memref<1x128xf32, #tpu.memory_space<vmem>>
      %100 = tpu.memref_slice %arg4[%c7_i32_53] : memref<9x!tpu.dma_semaphore, #tpu.memory_space<semaphore_mem>> -> memref<1x!tpu.dma_semaphore, #tpu.memory_space<semaphore_mem>>
      %101 = tpu.memref_squeeze %100 : memref<1x!tpu.dma_semaphore, #tpu.memory_space<semaphore_mem>> -> memref<!tpu.dma_semaphore, #tpu.memory_space<semaphore_mem>>
      tpu.wait_dma2 semaphore(%101 : memref<!tpu.dma_semaphore, #tpu.memory_space<semaphore_mem>>) src(%98 : memref<1x128xf32, #tpu.memory_space<any>>) dst(%99 : memref<1x128xf32, #tpu.memory_space<vmem>>)
    } else {
    }
    return
  }
  func.func @transform_1(%arg0: i32, %arg1: memref<8xi32, #tpu.memory_space<smem>>) -> (i32, i32) {
    %c0_i32 = arith.constant 0 : i32
    %c0_i32_0 = arith.constant 0 : i32
    return %arg0, %c0_i32 : i32, i32
  }
}

</mosaic_0001>

<bundles_post_ra>
// kernel: tpu_custom_call.1
= control target key start
LH: loop header
LB: loop body
LE: loop exit
PB: predicated region body
PF: predicated region fallthrough
CT: control target
= control target key end

     0   :  { %s1185_s0 = inlined_call_operand.hbm [shape: s32[8], index: 0, kind: input, shape index: {}]   ;;  %s1186_s1 = inlined_call_operand.hbm [shape: f32[1000,128], index: 1, kind: input, shape index: {}]   ;;  %s1187_s2 = inlined_call_operand.hbm [shape: f32[8,128], index: 2, kind: output, shape index: {}]  }
   0x1   :  { %s531_s11 = scalar_lea.hbm %s1185_s0, 16 }
   0x2   :  { %p532_p0 = scmp.ne.s32.totalorder %s1185_s0, %s531_s11  ;;  %p535_p1 = scmp.lt.u32.totalorder %s531_s11, %s1185_s0 }
   0x4   :  { %p537_p2 = pnand %p535_p1, %p532_p0 }
   0x6   :  { %540 = shalt.err (!%p537_p2)  }
   0x7   :  { %s856_s16 = smov [#allocation5]  }
   0x8   :  { %8 = dma.hbm_to_smem %s1185_s0, 16, %s856_s16, [#allocation4] }
   0x9   :  { %816 = dma.done.wait [#allocation4], 16 }
   0xa   :  { %817 = vsyncadd [#allocation4], 4294967280 }
   0xb   :  { %10 = sfence }
   0xc   :  { %11 = vsyncpa [#allocation7], 0  ;;  %s893_s19 = sld [smem:[#allocation5]]  ;;  %s857_s20 = smov [#allocation6]  }
   0xd   :  { %s30_s21 = sshll.u32 %s857_s20, 4  ;;  %s895_s22 = sld [smem:[#allocation5 + $0x1]]  ;;  %s897_s21 = int_to_ptr.vmem [resolvable:$true] %s30_s21 }
   0xe   :  { %s858_s23 = smov [#allocation6 + $0x1]   ;;  %s899_s25 = sld [smem:[#allocation5 + $0x2]] }
   0xf   :  { %s55_s24 = sshll.u32 %s858_s23, 4  ;;  %s859_s0 = smov [#allocation6 + $0x2]   ;;  %s901_s24 = int_to_ptr.vmem [resolvable:$true] %s55_s24 }
  0x10   :  { %s903_s26 = sshll.u32 %s859_s0, 4  ;;  %s905_s27 = sld [smem:[#allocation5 + $0x3]]  ;;  %s81_s26 = int_to_ptr.vmem [resolvable:$true] %s903_s26 }
  0x11   :  { %s918_s7 = scalar_lea.hbm %s1186_s1, 16000 }
  0x12   :  { %p1189_p3 = scmp.ne.s32.totalorder %s893_s19, 999  ;;  %s439_s28 = sshll.u32 %s893_s19, 4 }
  0x13   :  { %s22_s3 = scalar_lea.hbm %s1186_s1, %s439_s28  ;;  %p1190_p4 = scmp.ne.s32.totalorder %s895_s22, 999 }
  0x14   :  { %s541_s4 = scalar_lea.hbm %s22_s3, 16  ;;  %p546_p8 = scmp.lt.u32.totalorder %s22_s3, %s1186_s1 }
  0x15   :  { %p542_p5 = scmp.ne.s32.totalorder %s22_s3, %s541_s4  ;;  %p547_p9 = scmp.lt.u32.totalorder %s918_s7, %s541_s4 }
  0x16   :  { %p549_p11 = scmp.lt.u32.totalorder %s541_s4, %s22_s3 }
  0x17   :  { %p543_p6 = pnand %p542_p5, %p1189_p3  ;;  %p548_p10 = por %p547_p9, %p546_p8 }
  0x19   :  { %p544_p7 = pneg %p543_p6  ;;  %p550_p12 = por %p549_p11, %p548_p10 }
  0x1b   :  { %p551_p13 = pnand %p550_p12, %p544_p7 }
  0x1d   :  { %554 = shalt.err (!%p551_p13)  }
  0x1e   :  { %s555_s10 = scalar_lea.vmem %s897_s21, 16  ;;  %s929_s11 = scalar_lea.vmem %s897_s21, 128 }
  0x1f   :  { %p556_p0 = scmp.ne.s32.totalorder %s897_s21, %s555_s10  ;;  %p1188_p5 = scmp.lt.s32.totalorder %s897_s21, %s897_s21 }
  0x20   :  { %p563_p6 = scmp.lt.s32.totalorder %s929_s11, %s555_s10 }
  0x21   :  { %p557_p1 = pnand %p556_p0, %p1189_p3 }
  0x22   :  { %p564_p7 = por %p563_p6, %p1188_p5 }
  0x23   :  { %p558_p2 = pneg %p557_p1 }
  0x25   :  { %p565_p8 = pnand %p564_p7, %p558_p2 }
  0x27   :  { %568 = shalt.err (!%p565_p8)  }
  0x28   :  { %472 = dma.hbm_to_vmem [thread:$0]  (%p1189_p3), %s22_s3, 16, %s897_s21, [#allocation2] }
  0x29   :  { %s441_s12 = sshll.u32 %s895_s22, 4  ;;  %s443_s16 = sshll.u32 %s899_s25, 4 }
  0x2a   :  { %s45_s15 = scalar_lea.hbm %s1186_s1, %s441_s12 }
  0x2b   :  { %s569_s17 = scalar_lea.hbm %s45_s15, 16  ;;  %p574_p13 = scmp.lt.u32.totalorder %s45_s15, %s1186_s1 }
  0x2c   :  { %p570_p10 = scmp.ne.s32.totalorder %s45_s15, %s569_s17  ;;  %p575_p0 = scmp.lt.u32.totalorder %s918_s7, %s569_s17 }
  0x2d   :  { %p577_p2 = scmp.lt.u32.totalorder %s569_s17, %s45_s15 }
  0x2e   :  { %p571_p11 = pnand %p570_p10, %p1190_p4  ;;  %p576_p1 = por %p575_p0, %p574_p13 }
  0x30   :  { %p572_p12 = pneg %p571_p11  ;;  %p578_p6 = por %p577_p2, %p576_p1 }
  0x32   :  { %p579_p7 = pnand %p578_p6, %p572_p12 }
  0x34   :  { %582 = shalt.err (!%p579_p7)  }
  0x35   :  { %s583_s23 = scalar_lea.vmem %s901_s24, 16  ;;  %p590_p5 = scmp.lt.s32.totalorder %s901_s24, %s897_s21 }
  0x36   :  { %p584_p8 = scmp.ne.s32.totalorder %s901_s24, %s583_s23  ;;  %p591_p3 = scmp.lt.s32.totalorder %s929_s11, %s583_s23 }
  0x38   :  { %p585_p10 = pnand %p584_p8, %p1190_p4  ;;  %p592_p9 = por %p591_p3, %p590_p5 }
  0x3a   :  { %p586_p11 = pneg %p585_p10 }
  0x3c   :  { %p593_p0 = pnand %p592_p9, %p586_p11 }
  0x3e   :  { %596 = shalt.err (!%p593_p0)  }
  0x3f   :  { %474 = dma.hbm_to_vmem [thread:$0]  (%p1190_p4), %s45_s15, 16, %s901_s24, [#allocation2 + $0x1] }
  0x40   :  { %s70_s29 = scalar_lea.hbm %s1186_s1, %s443_s16  ;;  %p1196_p13 = scmp.ne.s32.totalorder %s899_s25, 999 }
  0x41   :  { %s597_s30 = scalar_lea.hbm %s70_s29, 16  ;;  %p602_p3 = scmp.lt.u32.totalorder %s70_s29, %s1186_s1 }
  0x42   :  { %p598_p12 = scmp.ne.s32.totalorder %s70_s29, %s597_s30  ;;  %p603_p5 = scmp.lt.u32.totalorder %s918_s7, %s597_s30 }
  0x43   :  { %p605_p6 = scmp.lt.u32.totalorder %s597_s30, %s70_s29 }
  0x44   :  { %p599_p1 = pnand %p598_p12, %p1196_p13  ;;  %p604_p9 = por %p603_p5, %p602_p3 }
  0x46   :  { %p600_p2 = pneg %p599_p1  ;;  %p606_p7 = por %p605_p6, %p604_p9 }
  0x48   :  { %p607_p8 = pnand %p606_p7, %p600_p2 }
  0x4a   :  { %610 = shalt.err (!%p607_p8)  }
  0x4b   :  { %s611_s24 = scalar_lea.vmem %s81_s26, 16  ;;  %p1197_p11 = pmov %p1196_p13 }
  0x4c   :  { %p612_p10 = scmp.ne.s32.totalorder %s81_s26, %s611_s24  ;;  %p618_p12 = scmp.lt.s32.totalorder %s81_s26, %s897_s21 }
  0x4d   :  { %p619_p13 = scmp.lt.s32.totalorder %s929_s11, %s611_s24 }
  0x4e   :  { %p613_p0 = pnand %p612_p10, %p1197_p11 }
  0x4f   :  { %p620_p1 = por %p619_p13, %p618_p12 }
  0x50   :  { %p614_p4 = pneg %p613_p0 }
  0x52   :  { %p621_p3 = pnand %p620_p1, %p614_p4 }
  0x54   :  { %624 = shalt.err (!%p621_p3)  }
  0x55   :  { %p1198_p5 = pmov %p1197_p11  ;;  %p1191_p2 = scmp.ne.s32.totalorder %s905_s27, 999 }
  0x56   :  { %s445_s5 = sshll.u32 %s905_s27, 4  ;;  %s860_s10 = smov [#allocation6 + $0x3]  }
  0x57   :  { %476 = dma.hbm_to_vmem [thread:$0]  (%p1198_p5), %s70_s29, 16, %s81_s26, [#allocation2 + $0x2] }
  0x58   :  { %s95_s9 = scalar_lea.hbm %s1186_s1, %s445_s5  ;;  %s105_s12 = sshll.u32 %s860_s10, 4  ;;  %s106_s12 = int_to_ptr.vmem [resolvable:$true] %s105_s12 }
  0x59   :  { %s983_s13 = sld [smem:[#allocation5 + $0x4]]  ;;  %s625_s14 = scalar_lea.hbm %s95_s9, 16 }
  0x5a   :  { %p626_p4 = scmp.ne.s32.totalorder %s95_s9, %s625_s14  ;;  %p630_p7 = scmp.lt.u32.totalorder %s95_s9, %s1186_s1 }
  0x5b   :  { %p631_p8 = scmp.lt.u32.totalorder %s918_s7, %s625_s14  ;;  %p633_p11 = scmp.lt.u32.totalorder %s625_s14, %s95_s9 }
  0x5c   :  { %p627_p9 = pnand %p626_p4, %p1191_p2 }
  0x5d   :  { %p632_p10 = por %p631_p8, %p630_p7 }
  0x5e   :  { %p628_p6 = pneg %p627_p9 }
  0x5f   :  { %p634_p0 = por %p633_p11, %p632_p10 }
  0x61   :  { %p635_p12 = pnand %p634_p0, %p628_p6 }
  0x63   :  { %638 = shalt.err (!%p635_p12)  }
  0x64   :  { %s639_s26 = scalar_lea.vmem %s106_s12, 16  ;;  %p646_p5 = scmp.lt.s32.totalorder %s106_s12, %s897_s21 }
  0x65   :  { %p640_p13 = scmp.ne.s32.totalorder %s106_s12, %s639_s26  ;;  %p647_p4 = scmp.lt.s32.totalorder %s929_s11, %s639_s26 }
  0x67   :  { %p641_p1 = pnand %p640_p13, %p1191_p2  ;;  %p648_p9 = por %p647_p4, %p646_p5 }
  0x69   :  { %p642_p3 = pneg %p641_p1 }
  0x6b   :  { %p649_p7 = pnand %p648_p9, %p642_p3 }
  0x6d   :  { %652 = shalt.err (!%p649_p7)  }
  0x6e   :  { %478 = dma.hbm_to_vmem [thread:$0]  (%p1191_p2), %s95_s9, 16, %s106_s12, [#allocation2 + $0x3] }
  0x6f   :  { %s861_s17 = smov [#allocation6 + $0x4]   ;;  %s997_s20 = sld [smem:[#allocation5 + $0x5]] }
  0x70   :  { %s130_s18 = sshll.u32 %s861_s17, 4  ;;  %s862_s23 = smov [#allocation6 + $0x5]   ;;  %s131_s18 = int_to_ptr.vmem [resolvable:$true] %s130_s18 }
  0x71   :  { %s155_s0 = sshll.u32 %s862_s23, 4  ;;  %s999_s28 = sld [smem:[#allocation5 + $0x6]]  ;;  %s1006_s0 = int_to_ptr.vmem [resolvable:$true] %s155_s0 }
  0x72   :  { %p1192_p6 = scmp.ne.s32.totalorder %s983_s13, 999  ;;  %s447_s29 = sshll.u32 %s983_s13, 4 }
  0x73   :  { %s120_s4 = scalar_lea.hbm %s1186_s1, %s447_s29 }
  0x74   :  { %s653_s24 = scalar_lea.hbm %s120_s4, 16  ;;  %p658_p0 = scmp.lt.u32.totalorder %s120_s4, %s1186_s1 }
  0x75   :  { %p654_p8 = scmp.ne.s32.totalorder %s120_s4, %s653_s24  ;;  %p659_p12 = scmp.lt.u32.totalorder %s918_s7, %s653_s24 }
  0x76   :  { %p661_p1 = scmp.lt.u32.totalorder %s653_s24, %s120_s4 }
  0x77   :  { %p655_p10 = pnand %p654_p8, %p1192_p6  ;;  %p660_p13 = por %p659_p12, %p658_p0 }
  0x79   :  { %p656_p11 = pneg %p655_p10  ;;  %p662_p3 = por %p661_p1, %p660_p13 }
  0x7b   :  { %p663_p5 = pnand %p662_p3, %p656_p11 }
  0x7d   :  { %666 = shalt.err (!%p663_p5)  }
  0x7e   :  { %s667_s8 = scalar_lea.vmem %s131_s18, 16  ;;  %p674_p8 = scmp.lt.s32.totalorder %s131_s18, %s897_s21 }
  0x7f   :  { %p668_p4 = scmp.ne.s32.totalorder %s131_s18, %s667_s8  ;;  %p675_p10 = scmp.lt.s32.totalorder %s929_s11, %s667_s8 }
  0x81   :  { %p669_p9 = pnand %p668_p4, %p1192_p6  ;;  %p676_p2 = por %p675_p10, %p674_p8 }
  0x83   :  { %p670_p7 = pneg %p669_p9 }
  0x85   :  { %p677_p0 = pnand %p676_p2, %p670_p7 }
  0x87   :  { %680 = shalt.err (!%p677_p0)  }
  0x88   :  { %480 = dma.hbm_to_vmem [thread:$0]  (%p1192_p6), %s120_s4, 16, %s131_s18, [#allocation2 + $0x4] }
  0x89   :  { %p1193_p11 = scmp.ne.s32.totalorder %s997_s20, 999  ;;  %s449_s9 = sshll.u32 %s997_s20, 4 }
  0x8a   :  { %s145_s14 = scalar_lea.hbm %s1186_s1, %s449_s9 }
  0x8b   :  { %s681_s15 = scalar_lea.hbm %s145_s14, 16  ;;  %p686_p2 = scmp.lt.u32.totalorder %s145_s14, %s1186_s1 }
  0x8c   :  { %p682_p12 = scmp.ne.s32.totalorder %s145_s14, %s681_s15  ;;  %p687_p3 = scmp.lt.u32.totalorder %s918_s7, %s681_s15 }
  0x8d   :  { %p689_p4 = scmp.lt.u32.totalorder %s681_s15, %s145_s14 }
  0x8e   :  { %p683_p13 = pnand %p682_p12, %p1193_p11  ;;  %p688_p5 = por %p687_p3, %p686_p2 }
  0x90   :  { %p684_p1 = pneg %p683_p13  ;;  %p690_p9 = por %p689_p4, %p688_p5 }
  0x92   :  { %p691_p7 = pnand %p690_p9, %p684_p1 }
  0x94   :  { %694 = shalt.err (!%p691_p7)  }
  0x95   :  { %s695_s17 = scalar_lea.vmem %s1006_s0, 16  ;;  %p702_p12 = scmp.lt.s32.totalorder %s1006_s0, %s897_s21 }
  0x96   :  { %p696_p8 = scmp.ne.s32.totalorder %s1006_s0, %s695_s17  ;;  %p703_p13 = scmp.lt.s32.totalorder %s929_s11, %s695_s17 }
  0x98   :  { %p697_p10 = pnand %p696_p8, %p1193_p11  ;;  %p704_p6 = por %p703_p13, %p702_p12 }
  0x9a   :  { %p698_p0 = pneg %p697_p10 }
  0x9c   :  { %p705_p2 = pnand %p704_p6, %p698_p0 }
  0x9e   :  { %708 = shalt.err (!%p705_p2)  }
  0x9f   :  { %482 = dma.hbm_to_vmem [thread:$0]  (%p1193_p11), %s145_s14, 16, %s1006_s0, [#allocation2 + $0x5] }
  0xa0   :  { %p1194_p1 = scmp.ne.s32.totalorder %s999_s28, 999  ;;  %s451_s18 = sshll.u32 %s999_s28, 4 }
  0xa1   :  { %s170_s30 = scalar_lea.hbm %s1186_s1, %s451_s18  ;;  %s863_s3 = smov [#allocation6 + $0x6]  }
  0xa2   :  { %s180_s4 = sshll.u32 %s863_s3, 4  ;;  %s1046_s24 = sld [smem:[#allocation5 + $0x7]]  ;;  %s181_s4 = int_to_ptr.vmem [resolvable:$true] %s180_s4 }
  0xa3   :  { %s709_s5 = scalar_lea.hbm %s170_s30, 16  ;;  %p714_p4 = scmp.lt.u32.totalorder %s170_s30, %s1186_s1 }
  0xa4   :  { %p710_p6 = scmp.ne.s32.totalorder %s170_s30, %s709_s5  ;;  %p715_p9 = scmp.lt.u32.totalorder %s918_s7, %s709_s5 }
  0xa5   :  { %p717_p8 = scmp.lt.u32.totalorder %s709_s5, %s170_s30 }
  0xa6   :  { %p711_p3 = pnand %p710_p6, %p1194_p1  ;;  %p716_p7 = por %p715_p9, %p714_p4 }
  0xa8   :  { %p712_p5 = pneg %p711_p3  ;;  %p718_p10 = por %p717_p8, %p716_p7 }
  0xaa   :  { %p719_p0 = pnand %p718_p10, %p712_p5 }
  0xac   :  { %722 = shalt.err (!%p719_p0)  }
  0xad   :  { %s723_s0 = scalar_lea.vmem %s181_s4, 16  ;;  %p730_p6 = scmp.lt.s32.totalorder %s181_s4, %s897_s21 }
  0xae   :  { %p724_p12 = scmp.ne.s32.totalorder %s181_s4, %s723_s0  ;;  %p731_p3 = scmp.lt.s32.totalorder %s929_s11, %s723_s0 }
  0xb0   :  { %p725_p13 = pnand %p724_p12, %p1194_p1  ;;  %p732_p11 = por %p731_p3, %p730_p6 }
  0xb2   :  { %p726_p2 = pneg %p725_p13 }
  0xb4   :  { %p733_p4 = pnand %p732_p11, %p726_p2 }
  0xb6   :  { %736 = shalt.err (!%p733_p4)  }
  0xb7   :  { %484 = dma.hbm_to_vmem [thread:$0]  (%p1194_p1), %s170_s30, 16, %s181_s4, [#allocation2 + $0x6] }
  0xb8   :  { %p14_p5 = scmp.eq.s32.totalorder %s893_s19, 999  ;;  %s864_s9 = smov [#allocation6 + $0x7]  }
  0xb9   :  { %s205_s10 = sshll.u32 %s864_s9, 4  ;;  %p36_p9 = scmp.eq.s32.totalorder %s895_s22, 999  ;;  %s206_s10 = int_to_ptr.vmem [resolvable:$true] %s205_s10 }
  0xba   :  { %p61_p7 = scmp.eq.s32.totalorder %s899_s25, 999  ;;  %p1195_p10 = scmp.ne.s32.totalorder %s1046_s24, 999 }
  0xbb   :  { %p37_p8 = por %p36_p9, %p14_p5  ;;  %s453_s12 = sshll.u32 %s1046_s24, 4 }
  0xbc   :  { %s195_s16 = scalar_lea.hbm %s1186_s1, %s453_s12 }
  0xbd   :  { %p1069_p0 = por %p61_p7, %p37_p8  ;;  %s737_s17 = scalar_lea.hbm %s195_s16, 16 }
  0xbe   :  { %p738_p12 = scmp.ne.s32.totalorder %s195_s16, %s737_s17  ;;  %p742_p6 = scmp.lt.u32.totalorder %s195_s16, %s1186_s1 }
  0xbf   :  { %s1199_s26 = scalar_select %p1069_p0, 1, 0 }
  0xc0   :  { %p739_p13 = pnand %p738_p12, %p1195_p10  ;;  %p743_p3 = scmp.lt.u32.totalorder %s918_s7, %s737_s17 }
  0xc1   :  { %p745_p5 = scmp.lt.u32.totalorder %s737_s17, %s195_s16 }
  0xc2   :  { %p740_p2 = pneg %p739_p13  ;;  %p744_p4 = por %p743_p3, %p742_p6 }
  0xc4   :  { %p746_p9 = por %p745_p5, %p744_p4 }
  0xc6   :  { %p747_p1 = pnand %p746_p9, %p740_p2 }
  0xc8   :  { %750 = shalt.err (!%p747_p1)  }
  0xc9   :  { %s751_s29 = scalar_lea.vmem %s206_s10, 16  ;;  %p758_p12 = scmp.lt.s32.totalorder %s206_s10, %s897_s21 }
  0xca   :  { %p752_p7 = scmp.ne.s32.totalorder %s206_s10, %s751_s29  ;;  %p759_p13 = scmp.lt.s32.totalorder %s929_s11, %s751_s29 }
  0xcc   :  { %p753_p8 = pnand %p752_p7, %p1195_p10  ;;  %p760_p0 = por %p759_p13, %p758_p12 }
  0xce   :  { %p754_p11 = pneg %p753_p8 }
  0xd0   :  { %p761_p3 = pnand %p760_p0, %p754_p11 }
  0xd2   :  { %764 = shalt.err (!%p761_p3)  }
  0xd3   :  { %486 = dma.hbm_to_vmem [thread:$0]  (%p1195_p10), %s195_s16, 16, %s206_s10, [#allocation2 + $0x7] }
  0xd4   :  { %p1200_p1 = scmp.ne.s32.totalorder %s1199_s26, 0  ;;  %p1201_p2 = scmp.eq.s32.totalorder %s905_s27, 999 }
  0xd5   :  { %p111_p4 = scmp.eq.s32.totalorder %s983_s13, 999  ;;  %p136_p5 = scmp.eq.s32.totalorder %s997_s20, 999 }
  0xd6   :  { %p87_p6 = por %p1201_p2, %p1200_p1  ;;  %p161_p11 = scmp.eq.s32.totalorder %s999_s28, 999 }
  0xd7   :  { %p186_p0 = scmp.eq.s32.totalorder %s1046_s24, 999  ;;  %s865_s30 = smov [#allocation3]  }
  0xd8   :  { %p112_p9 = por %p111_p4, %p87_p6  ;;  %s221_s3 = sshll.u32 %s865_s30, 4  ;;  %s222_s3 = int_to_ptr.vmem [resolvable:$true] %s221_s3 }
  0xd9   :  { %s212_s6 = scalar_lea.hbm %s1186_s1, 15984  ;;  %p771_p6 = scmp.lt.u32.totalorder %s918_s7, %s918_s7 }
  0xda   :  { %p137_p7 = por %p136_p5, %p112_p9  ;;  %p766_p13 = scmp.ne.s32.totalorder %s212_s6, %s918_s7 }
  0xdb   :  { %p770_p2 = scmp.lt.u32.totalorder %s212_s6, %s1186_s1  ;;  %p773_p5 = scmp.lt.u32.totalorder %s918_s7, %s212_s6 }
  0xdc   :  { %p162_p8 = por %p161_p11, %p137_p7 }
  0xdd   :  { %p772_p4 = por %p771_p6, %p770_p2 }
  0xde   :  { %p1096_p12 = por %p186_p0, %p162_p8 }
  0xdf   :  { %p774_p9 = por %p773_p5, %p772_p4 }
  0xe0   :  { %p767_p3 = pnand %p766_p13, %p1096_p12 }
  0xe2   :  { %p768_p1 = pneg %p767_p3 }
  0xe4   :  { %p775_p11 = pnand %p774_p9, %p768_p1 }
  0xe6   :  { %778 = shalt.err (!%p775_p11)  }
  0xe7   :  { %s779_s10 = scalar_lea.vmem %s222_s3, 16  ;;  %p786_p10 = scmp.lt.s32.totalorder %s222_s3, %s222_s3 }
  0xe8   :  { %p780_p0 = scmp.ne.s32.totalorder %s222_s3, %s779_s10  ;;  %p787_p13 = scmp.lt.s32.totalorder %s779_s10, %s779_s10 }
  0xea   :  { %p781_p7 = pnand %p780_p0, %p1096_p12  ;;  %p788_p3 = por %p787_p13, %p786_p10 }
  0xec   :  { %p782_p8 = pneg %p781_p7 }
  0xee   :  { %p789_p2 = pnand %p788_p3, %p782_p8 }
  0xf0   :  { %792 = shalt.err (!%p789_p2)  }
  0xf1   :  { %487 = dma.hbm_to_vmem [thread:$0]  (%p1096_p12), %s212_s6, 16, %s222_s3, [#allocation2 + $0x8] }
  0xf2   :  { %819 = dma.done.wait (%p1096_p12), [#allocation2 + $0x8], 16 }
  0xf3   :  { %821 = vsyncadd (%p1096_p12), [#allocation2 + $0x8], 4294967280  ;;  %p1203_p1 = scmp.ne.s32.totalorder %s893_s19, 999 }
  0xf4   :  { %v231_v0 = vld [vmem:[#allocation3] sm:$0x1] (!%p1203_p1) }
  0xf5   :  { %230 = sbr.rel (%p1203_p1) target bundleno = 252 (0xfc), region = 109  ;;  %232 = vst [vmem:[#allocation6] sm:$0x1] (!%p1203_p1), %v231_v0 }
  0xfc PF:  { %p1204_p6 = scmp.ne.s32.totalorder %s895_s22, 999 }
  0xfd   :  { %v236_v1 = vld [vmem:[#allocation3] sm:$0x1] (!%p1204_p6) }
  0xfe   :  { %235 = sbr.rel (%p1204_p6) target bundleno = 261 (0x105), region = 113  ;;  %237 = vst [vmem:[#allocation6 + $0x1] sm:$0x1] (!%p1204_p6), %v236_v1 }
 0x105 PF:  { %p1205_p10 = scmp.ne.s32.totalorder %s899_s25, 999 }
 0x106   :  { %v241_v2 = vld [vmem:[#allocation3] sm:$0x1] (!%p1205_p10) }
 0x107   :  { %240 = sbr.rel (%p1205_p10) target bundleno = 270 (0x10e), region = 117  ;;  %242 = vst [vmem:[#allocation6 + $0x2] sm:$0x1] (!%p1205_p10), %v241_v2 }
 0x10e PF:  { %p1206_p12 = scmp.ne.s32.totalorder %s905_s27, 999 }
 0x10f   :  { %v246_v3 = vld [vmem:[#allocation3] sm:$0x1] (!%p1206_p12) }
 0x110   :  { %245 = sbr.rel (%p1206_p12) target bundleno = 279 (0x117), region = 121  ;;  %247 = vst [vmem:[#allocation6 + $0x3] sm:$0x1] (!%p1206_p12), %v246_v3 }
 0x117 PF:  { %p1207_p4 = scmp.ne.s32.totalorder %s983_s13, 999 }
 0x118   :  { %v251_v4 = vld [vmem:[#allocation3] sm:$0x1] (!%p1207_p4) }
 0x119   :  { %250 = sbr.rel (%p1207_p4) target bundleno = 288 (0x120), region = 125  ;;  %252 = vst [vmem:[#allocation6 + $0x4] sm:$0x1] (!%p1207_p4), %v251_v4 }
 0x120 PF:  { %p1208_p5 = scmp.ne.s32.totalorder %s997_s20, 999 }
 0x121   :  { %v256_v5 = vld [vmem:[#allocation3] sm:$0x1] (!%p1208_p5) }
 0x122   :  { %255 = sbr.rel (%p1208_p5) target bundleno = 297 (0x129), region = 129  ;;  %257 = vst [vmem:[#allocation6 + $0x5] sm:$0x1] (!%p1208_p5), %v256_v5 }
 0x129 PF:  { %p1209_p9 = scmp.ne.s32.totalorder %s999_s28, 999 }
 0x12a   :  { %v261_v6 = vld [vmem:[#allocation3] sm:$0x1] (!%p1209_p9) }
 0x12b   :  { %260 = sbr.rel (%p1209_p9) target bundleno = 306 (0x132), region = 133  ;;  %262 = vst [vmem:[#allocation6 + $0x6] sm:$0x1] (!%p1209_p9), %v261_v6 }
 0x132 PF:  { %p1210_p11 = scmp.ne.s32.totalorder %s1046_s24, 999 }
 0x133   :  { %v266_v7 = vld [vmem:[#allocation3] sm:$0x1] (!%p1210_p11) }
 0x134   :  { %265 = sbr.rel (%p1210_p11) target bundleno = 315 (0x13b), region = 137  ;;  %267 = vst [vmem:[#allocation6 + $0x7] sm:$0x1] (!%p1210_p11), %v266_v7 }
 0x13b PF:  { %p1211_p0 = scmp.ne.s32.totalorder %s893_s19, 999 }
 0x13d   :  { %823 = dma.done.wait (%p1211_p0), [#allocation2], 16  ;;  %p1212_p7 = pmov %p1211_p0 }
 0x13e   :  { %p1213_p8 = scmp.ne.s32.totalorder %s895_s22, 999 }
 0x13f   :  { %825 = vsyncadd (%p1212_p7), [#allocation2], 4294967280 }
 0x140   :  { %827 = dma.done.wait (%p1213_p8), [#allocation2 + $0x1], 16  ;;  %p1214_p13 = pmov %p1213_p8 }
 0x141   :  { %p1215_p3 = scmp.ne.s32.totalorder %s899_s25, 999 }
 0x142   :  { %829 = vsyncadd (%p1214_p13), [#allocation2 + $0x1], 4294967280 }
 0x143   :  { %831 = dma.done.wait (%p1215_p3), [#allocation2 + $0x2], 16  ;;  %p1216_p2 = pmov %p1215_p3 }
 0x144   :  { %p1217_p1 = scmp.ne.s32.totalorder %s905_s27, 999 }
 0x145   :  { %833 = vsyncadd (%p1216_p2), [#allocation2 + $0x2], 4294967280 }
 0x146   :  { %835 = dma.done.wait (%p1217_p1), [#allocation2 + $0x3], 16  ;;  %p1218_p6 = pmov %p1217_p1 }
 0x147   :  { %p1219_p10 = scmp.ne.s32.totalorder %s983_s13, 999 }
 0x148   :  { %837 = vsyncadd (%p1218_p6), [#allocation2 + $0x3], 4294967280 }
 0x149   :  { %839 = dma.done.wait (%p1219_p10), [#allocation2 + $0x4], 16  ;;  %p1220_p12 = pmov %p1219_p10 }
 0x14a   :  { %p1221_p4 = scmp.ne.s32.totalorder %s997_s20, 999 }
 0x14b   :  { %841 = vsyncadd (%p1220_p12), [#allocation2 + $0x4], 4294967280 }
 0x14c   :  { %843 = dma.done.wait (%p1221_p4), [#allocation2 + $0x5], 16  ;;  %p1222_p5 = pmov %p1221_p4 }
 0x14d   :  { %p1223_p9 = scmp.ne.s32.totalorder %s999_s28, 999 }
 0x14e   :  { %845 = vsyncadd (%p1222_p5), [#allocation2 + $0x5], 4294967280 }
 0x14f   :  { %847 = dma.done.wait (%p1223_p9), [#allocation2 + $0x6], 16  ;;  %p1224_p11 = pmov %p1223_p9 }
 0x150   :  { %p1225_p0 = scmp.ne.s32.totalorder %s1046_s24, 999 }
 0x151   :  { %849 = vsyncadd (%p1224_p11), [#allocation2 + $0x6], 4294967280 }
 0x152   :  { %851 = dma.done.wait (%p1225_p0), [#allocation2 + $0x7], 16  ;;  %p1226_p7 = pmov %p1225_p0 }
 0x153   :  { %p795_p8 = scmp.ne.s32.totalorder %s897_s21, %s929_s11  ;;  %p800_p13 = scmp.lt.s32.totalorder %s929_s11, %s929_s11 }
 0x154   :  { %853 = vsyncadd (%p1226_p7), [#allocation2 + $0x7], 4294967280  ;;  %p1227_p3 = scmp.lt.s32.totalorder %s897_s21, %s897_s21 }
 0x156   :  { %p801_p2 = por %p800_p13, %p1227_p3 }
 0x158   :  { %p802_p1 = pnand %p801_p2, %p795_p8 }
 0x15a   :  { %805 = shalt.err (!%p802_p1)
}
 0x15b   :  { %s806_s22 = scalar_lea.hbm %s1187_s2, 128 }
 0x15c   :  { %p807_p6 = scmp.ne.s32.totalorder %s1187_s2, %s806_s22  ;;  %p810_p10 = scmp.lt.u32.totalorder %s806_s22, %s1187_s2 }
 0x15e   :  { %p812_p12 = pnand %p810_p10, %p807_p6 }
 0x160   :  { %815 = shalt.err (!%p812_p12)
}
 0x161   :  { %356 = dma.vmem_to_hbm [thread:$0]  %s897_s21, 128, %s1187_s2, [#allocation7]  }
 0x162   :  { %854 = dma.done.wait [#allocation7], 128  }
 0x163   :  { %855 = vsyncadd [#allocation7], 4294967168 }
 0x164   :  { %360 = vsyncpa [#allocation7], 1 }
 0x165   :  { %361 = vsyncmov [#allocation2] }
 0x168   :  { %s362_s28 = vpop.sfrf %361 }
 0x169   :  { %p462_p4 = scmp.ne.s32.totalorder %s362_s28, 0 }
 0x16b   :  { %366 = shalt.err (%p462_p4)  }
 0x16c   :  { %368 = vsyncmov [#allocation2 + $0x1] }
 0x16f   :  { %s369_s24 = vpop.sfrf %368 }
 0x170   :  { %p463_p5 = scmp.ne.s32.totalorder %s369_s24, 0 }
 0x172   :  { %373 = shalt.err (%p463_p5)  }
 0x173   :  { %375 = vsyncmov [#allocation2 + $0x2] }
 0x176   :  { %s376_s12 = vpop.sfrf %375 }
 0x177   :  { %p464_p9 = scmp.ne.s32.totalorder %s376_s12, 0 }
 0x179   :  { %380 = shalt.err (%p464_p9)  }
 0x17a   :  { %382 = vsyncmov [#allocation2 + $0x3] }
 0x17d   :  { %s383_s14 = vpop.sfrf %382 }
 0x17e   :  { %p465_p11 = scmp.ne.s32.totalorder %s383_s14, 0 }
 0x180   :  { %387 = shalt.err (%p465_p11)  }
 0x181   :  { %389 = vsyncmov [#allocation2 + $0x4] }
 0x184   :  { %s390_s2 = vpop.sfrf %389 }
 0x185   :  { %p466_p0 = scmp.ne.s32.totalorder %s390_s2, 0 }
 0x187   :  { %394 = shalt.err (%p466_p0)  }
 0x188   :  { %396 = vsyncmov [#allocation2 + $0x5] }
 0x18b   :  { %s397_s21 = vpop.sfrf %396 }
 0x18c   :  { %p467_p7 = scmp.ne.s32.totalorder %s397_s21, 0 }
 0x18e   :  { %401 = shalt.err (%p467_p7)  }
 0x18f   :  { %403 = vsyncmov [#allocation2 + $0x6] }
 0x192   :  { %s404_s15 = vpop.sfrf %403 }
 0x193   :  { %p468_p8 = scmp.ne.s32.totalorder %s404_s15, 0 }
 0x195   :  { %408 = shalt.err (%p468_p8)  }
 0x196   :  { %410 = vsyncmov [#allocation2 + $0x7] }
 0x199   :  { %s411_s16 = vpop.sfrf %410 }
 0x19a   :  { %p469_p13 = scmp.ne.s32.totalorder %s411_s16, 0 }
 0x19c   :  { %415 = shalt.err (%p469_p13)  }
 0x19d   :  { %417 = vsyncmov [#allocation2 + $0x8] }
 0x1a0   :  { %s418_s26 = vpop.sfrf %417 }
 0x1a1   :  { %p470_p3 = scmp.ne.s32.totalorder %s418_s26, 0 }
 0x1a3   :  { %422 = shalt.err (%p470_p3)  }

</bundles_post_ra>
